<compile_context>
chip_gen: v7x
topology: tpu7x:2x2x1
jax: 0.10.0
libtpu: 0.0.40
codegen_flags: <defaults>
</compile_context>

<pallas_src>
import functools
import numpy as np
import jax
import jax.numpy as jnp
from jax import lax
from jax.experimental import pallas as pl
from jax.experimental.pallas import tpu as pltpu

BN_EPS = 1e-5

# Cast matmul operands to bf16 (keep f32 accumulation / epilogue) for 2x MXU rate
# and half the VMEM traffic on v6e/v7x.  Left False here so the strict f32
# correctness check below passes; skip on v5e (no bf16 VPU and underfilled MXU).
USE_BF16_MATMUL = False


# ----------------------------------------------------------------------------
# Host-side constant builders (numpy)
# ----------------------------------------------------------------------------
def _interp_matrix(out_size, in_size):
    """Interpolation matrix matching F.interpolate(mode='bilinear', align_corners=False)."""
    o = np.arange(out_size, dtype=np.float64)
    src = (o + 0.5) * (in_size / out_size) - 0.5
    src = np.clip(src, 0.0, in_size - 1)
    i0 = np.floor(src).astype(np.int64)
    i1 = np.minimum(i0 + 1, in_size - 1)
    frac = src - i0
    M = np.zeros((out_size, in_size), dtype=np.float32)
    M[np.arange(out_size), i0] += (1.0 - frac)
    M[np.arange(out_size), i1] += frac
    return M


def _select_matrix(out_size, stride):
    """S[o, i] = 1 iff i == stride*o (row/col selection == output of a strided conv)."""
    S = np.zeros((out_size, out_size * stride), dtype=np.float32)
    S[np.arange(out_size), stride * np.arange(out_size)] = 1.0
    return S


def _tap_masks(H, W, spb):
    """(9, spb*H*W) 0/1 masks: tap (dy,dx) is valid iff (h+dy, w+dx) is inside the image."""
    hw = H * W
    h = np.arange(hw) // W
    w = np.arange(hw) % W
    m = np.zeros((9, spb * hw), dtype=np.float32)
    t = 0
    for dy in (-1, 0, 1):
        for dx in (-1, 0, 1):
            valid = (h + dy >= 0) & (h + dy < H) & (w + dx >= 0) & (w + dx < W)
            m[t] = np.tile(valid.astype(np.float32), spb)
            t += 1
    return m


def _tap_shifts(W, L, sign):
    """Lane-roll amounts so that out[:, p] = in[:, p + dy*W + dx] (circularly)."""
    shifts = []
    for dy in (-1, 0, 1):
        for dx in (-1, 0, 1):
            delta = dy * W + dx
            shifts.append(int((sign * -delta) % L))
    return tuple(shifts)


@functools.lru_cache(maxsize=None)
def _roll_sign():
    """One-time eager probe of pltpu.roll's rotation direction.

    pltpu.roll is documented to match jnp.roll (out[i] = in[i - shift]); this
    guards the shift/mask pairing against any convention difference.
    """
    def probe(x_ref, o_ref):
        o_ref[...] = pltpu.roll(x_ref[...], 1, axis=1)

    x = jnp.broadcast_to(jnp.arange(128, dtype=jnp.float32), (8, 128))
    y = pl.pallas_call(probe, out_shape=jax.ShapeDtypeStruct((8, 128), jnp.float32))(x)
    return 1 if float(y[0, 0]) == 127.0 else -1


# ----------------------------------------------------------------------------
# BN folding (one-time constant transform in the wrapper)
# ----------------------------------------------------------------------------
def _fold_conv_bn(w_hwio, bn):
    """Fold inference BN into the conv.

    Returns W (KH*KW, Cout, Cin) tap-major (tap order = masks/shifts order) and
    bias (Cout, 1).
    """
    gamma, beta, mean, var = bn
    scale = gamma / jnp.sqrt(var + BN_EPS)                  # (Cout,)
    bias = (beta - mean * scale).reshape(-1, 1)             # (Cout, 1)
    kh, kw, cin, cout = w_hwio.shape
    w = jnp.transpose(w_hwio, (0, 1, 3, 2)).reshape(kh * kw, cout, cin)
    w = w * scale[None, :, None]
    return w.astype(jnp.float32), bias.astype(jnp.float32)


# ----------------------------------------------------------------------------
# Fused Pallas kernel for the whole HighResolutionModule
# ----------------------------------------------------------------------------
def _make_fused_kernel(nb0, nb1, shifts0, shifts1, compute_dtype):

    def _mm(a, b):
        return jnp.dot(a.astype(compute_dtype), b.astype(compute_dtype),
                       preferred_element_type=jnp.float32)

    def conv3x3(z, masks, shifts, w_taps, bias, *, relu, residual=None):
        """3x3 pad-1 conv (+folded-BN bias, +residual, +ReLU) on a flat (Cin, L) slab.

        tap_t = border_mask_t * lane_roll(z, shift_t);  y = sum_t W_t @ tap_t.
        Rolls ride the XLU, masks the VPU, tap matmuls the MXU; no relayouts,
        no padded scratch, no sublane concatenation.
        """
        acc = None
        for t, s in enumerate(shifts):
            if s == 0:                                       # center tap: no wrap, mask all-ones
                zt = z
            else:
                zt = pltpu.roll(z, s, axis=1) * masks[t:t + 1, :]
            d = _mm(w_taps[t], zt)                           # (Cout, L)
            acc = d if acc is None else acc + d
        y = acc + bias
        if residual is not None:
            y = y + residual
        if relu:
            y = jnp.maximum(y, 0.0)
        return y

    def basic_block(z, masks, shifts, w1, b1, w2, b2):
        h = conv3x3(z, masks, shifts, w1, b1, relu=True)
        return conv3x3(h, masks, shifts, w2, b2, relu=True, residual=z)

    def kernel(x0_ref, x1_ref, wb0_ref, bb0_ref, wb1_ref, bb1_ref,
               w01_ref, b01_ref, w10_ref, b10_ref,
               upT_ref, selT_ref, m0_ref, m1_ref,
               o0_ref, o1_ref):
        m0 = m0_ref[...]                                     # (9, L0)
        m1 = m1_ref[...]                                     # (9, L1)

        # ---- branch BasicBlock chains; activations stay as flat (C, L) in vregs ----
        z0 = x0_ref[...]                                     # (C0, L0)
        for b in range(nb0):
            z0 = basic_block(z0, m0, shifts0,
                             wb0_ref[2 * b], bb0_ref[2 * b],
                             wb0_ref[2 * b + 1], bb0_ref[2 * b + 1])

        z1 = x1_ref[...]                                     # (C1, L1)
        for b in range(nb1):
            z1 = basic_block(z1, m1, shifts1,
                             wb1_ref[2 * b], bb1_ref[2 * b],
                             wb1_ref[2 * b + 1], bb1_ref[2 * b + 1])

        # ---- fuse y0 = relu(x0 + bilinear_up(bn(conv1x1(x1)))) ----
        u = _mm(w01_ref[0], z1) + b01_ref[...]               # (C0, L1)
        up = _mm(u, upT_ref[...])                            # (C0, L0) single Kronecker matmul
        o0_ref[...] = jnp.maximum(z0 + up, 0.0)

        # ---- fuse y1 = relu(bn(conv3x3_stride2(x0)) + x1) ----
        # Dense 3x3 conv in flat layout, then ONE (L0, L1) selection matmul keeps
        # only the stride-2 output positions (identical to the strided conv).
        d = conv3x3(z0, m0, shifts0, w10_ref[...], b10_ref[...], relu=False)
        ds = _mm(d, selT_ref[...])                           # (C1, L1)
        o1_ref[...] = jnp.maximum(ds + z1, 0.0)

    return kernel


def hr_module_forward(x0_nchw, x1_nchw, params, *, samples_per_block=None):
    """Fused HighResolutionModule forward. Inputs / outputs are NCHW (PyTorch layout)."""
    N, C0, H0, W0 = x0_nchw.shape
    N1, C1, H1, W1 = x1_nchw.shape
    assert N == N1 and H0 == 2 * H1 and W0 == 2 * W1
    HW0, HW1 = H0 * W0, H1 * W1

    # Samples per grid block.  Default: whole batch in one block -> x1/o1 are
    # >=128 lanes (unmasked stores) and the MXU sees wide columns.  On v7x use
    # samples_per_block = N // 2 (grid of 2, "parallel") to feed both TensorCores.
    spb = N if samples_per_block is None else samples_per_block
    assert N % spb == 0
    nblk = N // spb
    L0, L1 = spb * HW0, spb * HW1
    assert nblk == 1 or (L0 % 128 == 0 and L1 % 128 == 0), \
        "per-block lane width must stay a multiple of 128 when splitting the batch"

    # Fold BN (inference running-stats affine) into the conv weights once.
    wb0, bb0, wb1, bb1 = [], [], [], []
    for blk in params["branches"][0]:
        for wk, bk in (("w1", "bn1"), ("w2", "bn2")):
            w, b = _fold_conv_bn(blk[wk], blk[bk]); wb0.append(w); bb0.append(b)
    for blk in params["branches"][1]:
        for wk, bk in (("w1", "bn1"), ("w2", "bn2")):
            w, b = _fold_conv_bn(blk[wk], blk[bk]); wb1.append(w); bb1.append(b)
    wb0, bb0 = jnp.stack(wb0), jnp.stack(bb0)     # (2*nb0, 9, C0, C0), (2*nb0, C0, 1)
    wb1, bb1 = jnp.stack(wb1), jnp.stack(bb1)     # (2*nb1, 9, C1, C1), (2*nb1, C1, 1)
    w01, b01 = _fold_conv_bn(params["fuse01_w"], params["fuse01_bn"])  # (1, C0, C1), (C0, 1)
    w10, b10 = _fold_conv_bn(params["fuse10_w"], params["fuse10_bn"])  # (9, C1, C0), (C1, 1)

    # Lane-dense constants (block-diagonal over the samples in a block):
    #   upT : (L1, L0) bilinear upsample (align_corners=False) as one matmul
    #   selT: (L0, L1) even-row/col selection == output of the stride-2 conv
    K_up = np.kron(_interp_matrix(H0, H1), _interp_matrix(W0, W1))     # (HW0, HW1)
    S_dn = np.kron(_select_matrix(H1, 2), _select_matrix(W1, 2))       # (HW1, HW0)
    eye = np.eye(spb, dtype=np.float32)
    upT = jnp.asarray(np.kron(eye, K_up.T))                            # (L1, L0)
    selT = jnp.asarray(np.kron(eye, S_dn.T))                           # (L0, L1)

    # 9-tap border masks (also zero any cross-sample data wrapped in by the roll).
    m0 = jnp.asarray(_tap_masks(H0, W0, spb))                          # (9, L0)
    m1 = jnp.asarray(_tap_masks(H1, W1, spb))                          # (9, L1)

    sign = _roll_sign()                                                # eager, cached
    shifts0 = _tap_shifts(W0, L0, sign)
    shifts1 = _tap_shifts(W1, L1, sign)

    nb0 = len(params["branches"][0])
    nb1 = len(params["branches"][1])
    compute_dtype = jnp.bfloat16 if USE_BF16_MATMUL else jnp.float32
    kernel = _make_fused_kernel(nb0, nb1, shifts0, shifts1, compute_dtype)

    # Channels-first flat layout with the batch folded into the lane axis:
    # (C, N*H*W).  The transpose lives in the wrapper, outside the kernel.
    x0f = jnp.transpose(x0_nchw, (1, 0, 2, 3)).reshape(C0, N * HW0)
    x1f = jnp.transpose(x1_nchw, (1, 0, 2, 3)).reshape(C1, N * HW1)

    def const_spec(shape):
        return pl.BlockSpec(shape, lambda n: (0,) * len(shape))

    out0, out1 = pl.pallas_call(
        kernel,
        out_shape=(jax.ShapeDtypeStruct((C0, N * HW0), jnp.float32),
                   jax.ShapeDtypeStruct((C1, N * HW1), jnp.float32)),
        grid=(nblk,),
        in_specs=[
            pl.BlockSpec((C0, L0), lambda n: (0, n)),
            pl.BlockSpec((C1, L1), lambda n: (0, n)),
            const_spec(wb0.shape), const_spec(bb0.shape),
            const_spec(wb1.shape), const_spec(bb1.shape),
            const_spec(w01.shape), const_spec(b01.shape),
            const_spec(w10.shape), const_spec(b10.shape),
            const_spec(upT.shape), const_spec(selT.shape),
            const_spec(m0.shape), const_spec(m1.shape),
        ],
        out_specs=(pl.BlockSpec((C0, L0), lambda n: (0, n)),
                   pl.BlockSpec((C1, L1), lambda n: (0, n))),
        compiler_params=pltpu.CompilerParams(dimension_semantics=("parallel",)),
    )(x0f, x1f, wb0, bb0, wb1, bb1, w01, b01, w10, b10, upT, selT, m0, m1)

    y0 = jnp.transpose(out0.reshape(C0, N, H0, W0), (1, 0, 2, 3))
    y1 = jnp.transpose(out1.reshape(C1, N, H1, W1), (1, 0, 2, 3))
    return [y0, y1]


# ----------------------------------------------------------------------------
# Deterministic synthetic parameters
# ----------------------------------------------------------------------------
def _init_conv(key, kh, kw, cin, cout):
    return 0.1 * jax.random.normal(key, (kh, kw, cin, cout), jnp.float32)


def _init_bn(key, c):
    k1, k2, k3, k4 = jax.random.split(key, 4)
    gamma = 1.0 + 0.1 * jax.random.normal(k1, (c,), jnp.float32)
    beta = 0.1 * jax.random.normal(k2, (c,), jnp.float32)
    mean = 0.1 * jax.random.normal(k3, (c,), jnp.float32)
    var = 1.0 + 0.05 * jnp.abs(jax.random.normal(k4, (c,), jnp.float32))
    return (gamma, beta, mean, var)


def init_hr_module_params(key, num_branches, num_blocks, channels):
    params = {"branches": []}
    for i in range(num_branches):
        c = channels[i]
        blocks = []
        for _ in range(num_blocks[i]):
            key, k1, k2, k3, k4 = jax.random.split(key, 5)
            blocks.append({
                "w1": _init_conv(k1, 3, 3, c, c), "bn1": _init_bn(k2, c),
                "w2": _init_conv(k3, 3, 3, c, c), "bn2": _init_bn(k4, c),
            })
        params["branches"].append(blocks)
    # fuse_layers[0][1]: 1x1 conv C1->C0 + BN(C0), then bilinear upsample.
    key, k1, k2 = jax.random.split(key, 3)
    params["fuse01_w"] = _init_conv(k1, 1, 1, channels[1], channels[0])
    params["fuse01_bn"] = _init_bn(k2, channels[0])
    # fuse_layers[1][0]: 3x3 stride-2 conv C0->C1 + BN(C1), no ReLU (k == i-j-1).
    key, k1, k2 = jax.random.split(key, 3)
    params["fuse10_w"] = _init_conv(k1, 3, 3, channels[0], channels[1])
    params["fuse10_bn"] = _init_bn(k2, channels[1])
    return params


# ----------------------------------------------------------------------------
# Pure-JAX reference (correctness oracle)
# ----------------------------------------------------------------------------
def _ref_conv_bn(x, w, bn, *, stride=1, pad=1, relu=False, residual=None):
    gamma, beta, mean, var = bn
    y = lax.conv_general_dilated(
        x, w, (stride, stride), [(pad, pad), (pad, pad)],
        dimension_numbers=("NCHW", "HWIO", "NCHW"),
        precision=lax.Precision.HIGHEST)
    scale = gamma / jnp.sqrt(var + BN_EPS)
    bias = beta - mean * scale
    y = y * scale[None, :, None, None] + bias[None, :, None, None]
    if residual is not None:
        y = y + residual
    if relu:
        y = jnp.maximum(y, 0.0)
    return y


def reference_forward(x0, x1, params):
    zs = []
    for x, branch in zip((x0, x1), params["branches"]):
        z = x
        for blk in branch:
            h = _ref_conv_bn(z, blk["w1"], blk["bn1"], relu=True)
            z = _ref_conv_bn(h, blk["w2"], blk["bn2"], relu=True, residual=z)
        zs.append(z)
    z0, z1 = zs
    H0, W0 = z0.shape[2], z0.shape[3]
    H1, W1 = z1.shape[2], z1.shape[3]
    Ah = jnp.asarray(_interp_matrix(H0, H1))
    Aw = jnp.asarray(_interp_matrix(W0, W1))
    u = _ref_conv_bn(z1, params["fuse01_w"], params["fuse01_bn"], pad=0)
    up = jnp.einsum("ih,nchw,jw->ncij", Ah, u, Aw, precision=lax.Precision.HIGHEST)
    y0 = jnp.maximum(z0 + up, 0.0)
    d = _ref_conv_bn(z0, params["fuse10_w"], params["fuse10_bn"], stride=2, pad=1)
    y1 = jnp.maximum(d + z1, 0.0)
    return y0, y1


# ----------------------------------------------------------------------------
if __name__ == "__main__":
    key = jax.random.PRNGKey(0)
    k_x0, k_x1, k_p = jax.random.split(key, 3)

    channels = [4, 8]       # num_inchannels == num_channels * BasicBlock.expansion
    num_blocks = [2, 2]

    # PyTorch-style NCHW inputs.
    x0 = jax.random.normal(k_x0, (2, channels[0], 16, 16), jnp.float32)
    x1 = jax.random.normal(k_x1, (2, channels[1], 8, 8), jnp.float32)

    params = init_hr_module_params(k_p, 2, num_blocks, channels)

    y0, y1 = hr_module_forward(x0, x1, params)
    y0 = jax.block_until_ready(y0)
    y1 = jax.block_until_ready(y1)

    assert y0.shape == (2, 4, 16, 16) and y1.shape == (2, 8, 8, 8)
    assert bool(jnp.all(jnp.isfinite(y0))) and bool(jnp.all(jnp.isfinite(y1)))

    # Correctness check against a pure-JAX reference of the same module.
    r0, r1 = reference_forward(x0, x1, params)
    np.testing.assert_allclose(np.asarray(y0), np.asarray(r0), rtol=3e-2, atol=3e-2)
    np.testing.assert_allclose(np.asarray(y1), np.asarray(r1), rtol=3e-2, atol=3e-2)

    print("KERNEL_OK")
</pallas_src>

<mosaic_0001>
module attributes {stable_mosaic.version = 11 : i64} {
  func.func @probe(%arg0: memref<8x128xf32, #tpu.memory_space<vmem>>, %arg1: memref<8x128xf32, #tpu.memory_space<vmem>>) attributes {dimension_semantics = [], scalar_prefetch = 0 : i64, scratch_operands = 0 : i64, tpu.core_type = #tpu.core_type<tc>} {
    %c0 = arith.constant 0 : index
    %c0_0 = arith.constant 0 : index
    %0 = vector.load %arg0[%c0, %c0_0] : memref<8x128xf32, #tpu.memory_space<vmem>>, vector<8x128xf32>
    %c1_i32 = arith.constant 1 : i32
    %1 = tpu.dynamic_rotate %0 by %c1_i32 dim 1 : vector<8x128xf32>, i32 -> vector<8x128xf32>
    %c0_1 = arith.constant 0 : index
    %c0_2 = arith.constant 0 : index
    %2 = vector.load %arg1[%c0_1, %c0_2] : memref<8x128xf32, #tpu.memory_space<vmem>>, vector<8x128xf32>
    tpu.vector_store %arg1[%c0_1, %c0_2], %1 {strides = array<i32>} : memref<8x128xf32, #tpu.memory_space<vmem>>, vector<8x128xf32>,
    return
  }
}

</mosaic_0001>

<bundles_post_ra>
// kernel: tpu_custom_call.1
= control target key start
LH: loop header
LB: loop body
LE: loop exit
PB: predicated region body
PF: predicated region fallthrough
CT: control target
= control target key end

     0   :  { %6 = vsyncpa [#allocation3], 0  ;;  %s128_s0 = inlined_call_operand.hbm [shape: f32[8,128], index: 0, kind: input, shape index: {}]   ;;  %s129_s1 = inlined_call_operand.hbm [shape: f32[8,128], index: 1, kind: output, shape index: {}]  }
   0x1   :  { %7 = vsyncpa [#allocation4], 0  ;;  %s91_s6 = smov [#allocation2]   ;;  %s43_s10 = scalar_lea.hbm %s128_s0, 128 }
   0x2   :  { %s14_s7 = sshll.u32 %s91_s6, 4  ;;  %p44_p0 = scmp.ne.s32.totalorder %s128_s0, %s43_s10  ;;  %s15_s7 = int_to_ptr.vmem [resolvable:$true] %s14_s7 }
   0x3   :  { %p47_p1 = scmp.lt.u32.totalorder %s43_s10, %s128_s0 }
   0x5   :  { %p49_p2 = pnand %p47_p1, %p44_p0 }
   0x7   :  { %52 = shalt.err (!%p49_p2)
}
   0x8   :  { %s53_s15 = scalar_lea.vmem %s15_s7, 128  ;;  %p58_p4 = scmp.lt.s32.totalorder %s15_s7, %s15_s7 }
   0x9   :  { %p54_p3 = scmp.ne.s32.totalorder %s15_s7, %s53_s15  ;;  %p59_p5 = scmp.lt.s32.totalorder %s53_s15, %s53_s15 }
   0xb   :  { %p60_p6 = por %p59_p5, %p58_p4 }
   0xd   :  { %p61_p7 = pnand %p60_p6, %p54_p3 }
   0xf   :  { %64 = shalt.err (!%p61_p7)
}
  0x10   :  { %17 = dma.hbm_to_vmem [thread:$0]  %s128_s0, 128, %s15_s7, [#allocation3]  }
  0x11   :  { %87 = dma.done.wait [#allocation3], 128  }
  0x12   :  { %88 = vsyncadd [#allocation3], 4294967168  ;;  %v21_v0 = vld [vmem:[#allocation2] sm:$0xff]  ;;  %s92_s18 = smov 1   ;;  %s93_s19 = smov [#allocation5]  }
  0x13   :  { %22 = vrot.lane.b32.xlu0 %v21_v0, %s92_s18  ;;  %s31_s20 = sshll.u32 %s93_s19, 4  ;;  %s32_s20 = int_to_ptr.vmem [resolvable:$true] %s31_s20 }
  0x14   :  { %s65_s21 = scalar_lea.vmem %s32_s20, 128  ;;  %p70_p9 = scmp.lt.s32.totalorder %s32_s20, %s32_s20 }
  0x15   :  { %p66_p8 = scmp.ne.s32.totalorder %s32_s20, %s65_s21  ;;  %p71_p10 = scmp.lt.s32.totalorder %s65_s21, %s65_s21 }
  0x17   :  { %p72_p11 = por %p71_p10, %p70_p9 }
  0x19   :  { %p73_p12 = pnand %p72_p11, %p66_p8 }
  0x85   :  { %v23_v1 = vpop.permute.xlu0 %22 }
  0x86   :  { %24 = vst [vmem:[#allocation5] sm:$0xff] %v23_v1 }
  0x87   :  { %76 = shalt.err (!%p73_p12)
}
  0x88   :  { %s77_s0 = scalar_lea.hbm %s129_s1, 128 }
  0x89   :  { %p78_p13 = scmp.ne.s32.totalorder %s129_s1, %s77_s0  ;;  %p81_p0 = scmp.lt.u32.totalorder %s77_s0, %s129_s1 }
  0x8b   :  { %p83_p1 = pnand %p81_p0, %p78_p13 }
  0x8d   :  { %86 = shalt.err (!%p83_p1)
}
  0x8e   :  { %34 = dma.vmem_to_hbm [thread:$0]  %s32_s20, 128, %s129_s1, [#allocation4]  }
  0x8f   :  { %89 = dma.done.wait [#allocation4], 128  }
  0x90   :  { %90 = vsyncadd [#allocation4], 4294967168 }
  0x91   :  { %38 = vsyncpa [#allocation3], 1 }
  0x92   :  { %39 = vsyncpa [#allocation4], 1 }

</bundles_post_ra>
